<compile_context>
chip_gen: v7x
topology: tpu7x:2x2x1
jax: 0.10.0
libtpu: 0.0.40
codegen_flags: <defaults>
</compile_context>

<pallas_src>
import functools

import jax
import jax.numpy as jnp
from jax.experimental import pallas as pl
from jax.experimental.pallas import tpu as pltpu


_MIN_PALLAS_ELEMS = 16 * 1024   # below this, fused jnp.einsum beats kernel dispatch
_FLATTEN_MAX = 512              # block-diagonal flatten while E*I and E*O <= this


def _round_up(x, m):
    return ((x + m - 1) // m) * m


def _vmem_budget():
    """(working-set budget, vmem_limit_bytes) sized per TPU generation."""
    try:
        cap = int(getattr(pltpu.get_tpu_info(), "vmem_capacity_bytes",
                          64 * 1024 * 1024))
    except Exception:
        cap = 64 * 1024 * 1024                    # conservative (v7x-sized VMEM)
    if cap >= 96 * 1024 * 1024:                   # v5e / v6e: 128 MiB physical
        return 64 * 1024 * 1024, 100 * 1024 * 1024
    return 24 * 1024 * 1024, 40 * 1024 * 1024     # v7x: 64 MiB physical


def _pick_b_tile(B, in_lanes, out_lanes, itemsize, budget, weight_bytes):
    """Largest sublane-aligned batch tile whose (8,128)-padded, double-buffered
    working set fits the budget; keeps >=2 grid steps for large B (v7x: 2 TCs)."""
    per_row = 2 * (_round_up(in_lanes, 128) + _round_up(out_lanes, 128)) * itemsize
    tm = (budget - weight_bytes) // max(per_row, 1)
    tm = max(8, min(int(tm), 8192))
    tm = (tm // 8) * 8
    if B >= 2048:
        tm = min(tm, _round_up(pl.cdiv(B, 2), 8))
    return B if tm >= B else tm


def _matmul_kernel(x_ref, w_ref, o_ref):
    # x_ref: (tm, K), w_ref: (K, N), o_ref: (tm, N) -- one MXU matmul per tile.
    o_ref[...] = jnp.dot(
        x_ref[...], w_ref[...], preferred_element_type=jnp.float32
    ).astype(o_ref.dtype)


def make_block_diagonal_weight(weight):
    """(E, O, I) -> block-diagonal (E*I, E*O), block e = weight[e].T.
    In a real model, call this ONCE at parameter-init time (hoisted)."""
    E, O, I = weight.shape
    w_io = jnp.transpose(weight, (0, 2, 1))                 # (E, I, O)
    eye = jnp.eye(E, dtype=weight.dtype)
    return jnp.einsum("eio,ef->eifo", w_io, eye).reshape(E * I, E * O)


def _ein_linear_flat(inp, weight):
    """Small E*I / E*O: single lane-dense matmul against a block-diag weight."""
    B, E, I = inp.shape
    O = weight.shape[1]
    EI, EO = E * I, E * O

    # One-time weight re-layout (hoist via make_block_diagonal_weight at init).
    w_bd = make_block_diagonal_weight(weight)
    x2 = inp.reshape(B, EI)                                  # metadata-only reshape

    itemsize = jnp.dtype(inp.dtype).itemsize
    budget, limit = _vmem_budget()
    # Resident weight (constant index_map), (8,128)-padded, 2x slack.
    w_bytes = 2 * _round_up(EI, 8) * _round_up(EO, 128) * itemsize
    tm = _pick_b_tile(B, EI, EO, itemsize, budget, w_bytes)

    out2 = pl.pallas_call(
        _matmul_kernel,
        out_shape=jax.ShapeDtypeStruct((B, EO), inp.dtype),
        grid_spec=pltpu.PrefetchScalarGridSpec(
            num_scalar_prefetch=0,
            grid=(pl.cdiv(B, tm),),
            in_specs=[
                # Activations: tile the batch dim, lane-dense E*I last dim.
                pl.BlockSpec((tm, EI), lambda i: (i, 0)),
                # Weight: constant index_map -> DMA'd once, stays resident.
                pl.BlockSpec((EI, EO), lambda i: (0, 0)),
            ],
            # Lane-dense output (E*O wide) instead of per-model 16-wide stores.
            out_specs=pl.BlockSpec((tm, EO), lambda i: (i, 0)),
        ),
        compiler_params=pltpu.CompilerParams(
            dimension_semantics=("parallel",),
            vmem_limit_bytes=limit,
        ),
    )(x2, w_bd)
    return out2.reshape(B, E, O)


def _ein_linear_grouped(inp, weight):
    """Large E*I or E*O: grid over (E, batch tiles) with Squeezed model dim."""
    B, E, I = inp.shape
    O = weight.shape[1]

    w_io = jnp.transpose(weight, (0, 2, 1))                  # (E, I, O), one-time
    itemsize = jnp.dtype(inp.dtype).itemsize
    budget, limit = _vmem_budget()
    w_bytes = 2 * _round_up(I, 8) * _round_up(O, 128) * itemsize  # per-e block, dbl-buf
    tm = _pick_b_tile(B, I, O, itemsize, budget, w_bytes)

    return pl.pallas_call(
        _matmul_kernel,
        out_shape=jax.ShapeDtypeStruct((B, E, O), inp.dtype),
        grid_spec=pltpu.PrefetchScalarGridSpec(
            num_scalar_prefetch=0,
            grid=(E, pl.cdiv(B, tm)),
            in_specs=[
                pl.BlockSpec((tm, pl.Squeezed(), I), lambda e, i: (i, e, 0)),
                pl.BlockSpec((pl.Squeezed(), I, O), lambda e, i: (e, 0, 0)),
            ],
            out_specs=pl.BlockSpec((tm, pl.Squeezed(), O), lambda e, i: (i, e, 0)),
        ),
        compiler_params=pltpu.CompilerParams(
            dimension_semantics=("parallel", "parallel"),
            vmem_limit_bytes=limit,
        ),
    )(inp, w_io)


@functools.partial(jax.jit, static_argnames=("compute_dtype", "force_pallas"))
def ein_linear(inp, weight, *, compute_dtype=None, force_pallas=False):
    """EinLinear forward: inp (B, E, I), weight (E, O, I) -> (B, E, O).
    bias is unsupported (the reference forward raises if bias is not None)."""
    B, E, I = inp.shape
    E_w, O, I_w = weight.shape
    assert E == E_w and I == I_w

    # Tiny-problem gate: a single-step pallas_call is pure fixed overhead;
    # let XLA fuse the einsum into neighboring ops instead.
    if not force_pallas and B * E * I < _MIN_PALLAS_ELEMS:
        return jnp.einsum("eoi,bei->beo", weight, inp)

    if compute_dtype is not None:   # optional: halve HBM traffic on this mem-bound op
        inp = inp.astype(compute_dtype)
        weight = weight.astype(compute_dtype)

    if E * I <= _FLATTEN_MAX and E * O <= _FLATTEN_MAX:
        return _ein_linear_flat(inp, weight)
    return _ein_linear_grouped(inp, weight)


if __name__ == "__main__":
    # Shapes consistent with the module: n_models=4, in=32, out=16, bias=False.
    B, E, I, O = 256, 4, 32, 16

    key = jax.random.PRNGKey(0)
    k_x, k_w = jax.random.split(key)
    x = jax.random.normal(k_x, (B, E, I), dtype=jnp.float32)
    bound = 1.0 / jnp.sqrt(jnp.float32(I))   # kaiming-uniform-ish scale
    weight = jax.random.uniform(
        k_w, (E, O, I), dtype=jnp.float32, minval=-bound, maxval=bound
    )

    # Exercise the Pallas (flattened, block-diagonal) path.
    out = ein_linear(x, weight, force_pallas=True)
    out = jax.block_until_ready(out)

    ref = jnp.einsum("eoi,bei->beo", weight, x)
    assert out.shape == (B, E, O), out.shape
    assert jnp.allclose(out, ref, atol=1e-5, rtol=1e-5), (
        float(jnp.max(jnp.abs(out - ref)))
    )

    # Tiny-shape gate dispatches to the fused einsum with identical semantics.
    out_small = jax.block_until_ready(ein_linear(x[:8], weight))
    assert jnp.allclose(out_small, ref[:8], atol=1e-5, rtol=1e-5)

    print("KERNEL_OK")
</pallas_src>

<mosaic_0001>
module attributes {stable_mosaic.version = 11 : i64} {
  func.func @_matmul_kernel(%arg0: i32, %arg1: memref<256x128xf32, #tpu.memory_space<vmem>>, %arg2: memref<128x64xf32, #tpu.memory_space<vmem>>, %arg3: memref<256x64xf32, #tpu.memory_space<vmem>>) attributes {dimension_semantics = [#tpu.dimension_semantics<parallel>], iteration_bounds = array<i64: 1>, scalar_prefetch = 0 : i64, scratch_operands = 0 : i64, tpu.core_type = #tpu.core_type<tc>, window_params = [{transform_indices = @transform_0, window_bounds = array<i64: 256, 128>}, {pipeline_mode = #tpu.pipeline_mode<synchronous>, transform_indices = @transform_1, window_bounds = array<i64: 128, 64>}, {transform_indices = @transform_2, window_bounds = array<i64: 256, 64>}]} {
    %c0 = arith.constant 0 : index
    %c0_0 = arith.constant 0 : index
    %0 = vector.load %arg1[%c0, %c0_0] : memref<256x128xf32, #tpu.memory_space<vmem>>, vector<256x128xf32>
    %c0_1 = arith.constant 0 : index
    %c0_2 = arith.constant 0 : index
    %1 = vector.load %arg2[%c0_1, %c0_2] : memref<128x64xf32, #tpu.memory_space<vmem>>, vector<128x64xf32>
    %cst = arith.constant dense<0.000000e+00> : vector<256x64xf32>
    %2 = tpu.matmul %0, %1, %cst {dimension_numbers = #tpu.dot_dimension_numbers<[1], [0], [0], [1], [0, 0, 1, 1], [], []>} : vector<256x128xf32>, vector<128x64xf32>, vector<256x64xf32> -> vector<256x64xf32>
    %c0_3 = arith.constant 0 : index
    %c0_4 = arith.constant 0 : index
    %3 = vector.load %arg3[%c0_3, %c0_4] : memref<256x64xf32, #tpu.memory_space<vmem>>, vector<256x64xf32>
    tpu.vector_store %arg3[%c0_3, %c0_4], %2 {strides = array<i32>} : memref<256x64xf32, #tpu.memory_space<vmem>>, vector<256x64xf32>,
    return
  }
  func.func @transform_0(%arg0: i32) -> (i32, i32) {
    %c0_i32 = arith.constant 0 : i32
    %c0_i32_0 = arith.constant 0 : i32
    return %arg0, %c0_i32 : i32, i32
  }
  func.func @transform_1(%arg0: i32) -> (i32, i32) {
    %c0_i32 = arith.constant 0 : i32
    %c0_i32_0 = arith.constant 0 : i32
    %c0_i32_1 = arith.constant 0 : i32
    return %c0_i32, %c0_i32_0 : i32, i32
  }
  func.func @transform_2(%arg0: i32) -> (i32, i32) {
    %c0_i32 = arith.constant 0 : i32
    %c0_i32_0 = arith.constant 0 : i32
    return %arg0, %c0_i32 : i32, i32
  }
}

</mosaic_0001>

<bundles_post_ra>
// kernel: ein_linear.1
= control target key start
LH: loop header
LB: loop body
LE: loop exit
PB: predicated region body
PF: predicated region fallthrough
CT: control target
= control target key end

     0   :  { %vm284_vm0 = vcmask 523264   ;;  %s784_s1 = inlined_call_operand.vmem [shape: f32[128,64], index: 1, kind: input, shape index: {}]   ;;  %s785_s0 = inlined_call_operand.vmem [shape: f32[256,128], index: 0, kind: input, shape index: {}]   ;;  %s786_s2 = inlined_call_operand.vmem [shape: f32[256,64], index: 2, kind: output, shape index: {}]  }
   0x1   :  { %v43_v0 = vld [vmem:[%s784_s1] sm:$0xff]  ;;  %v44_v1 = vld [vmem:[%s784_s1 + $0x8] sm:$0xff]  ;;  %v45_v2 = vld [vmem:[%s784_s1 + $0x10] sm:$0xff] }
   0x2   :  { %v449_v3 = vpack.c.bf16 %v44_v1, %v43_v0  ;;  %v46_v4 = vld [vmem:[%s784_s1 + $0x18] sm:$0xff]  ;;  %v47_v6 = vld [vmem:[%s784_s1 + $0x20] sm:$0xff]  ;;  %v48_v7 = vld [vmem:[%s784_s1 + $0x28] sm:$0xff] }
   0x3   :  { %v453_v5 = vpack.c.bf16 %v46_v4, %v45_v2  ;;  %v457_v8 = vpack.c.bf16 %v48_v7, %v47_v6  ;;  %v11_v9 = vld [vmem:[%s785_s0] sm:$0xff]  ;;  %v49_v11 = vld [vmem:[%s784_s1 + $0x30] sm:$0xff]  ;;  %v50_v12 = vld [vmem:[%s784_s1 + $0x38] sm:$0xff] }
   0x4   :  { %450 = vmatprep.subr.bf16.mxu0 %v449_v3  ;;  %481 = vmatprep.subr.bf16.mxu1 %v449_v3  ;;  %v27_v10 = vld [vmem:[%s785_s0 + $0x80] sm:$0xff]  ;;  %v461_v13 = vpack.c.bf16 %v50_v12, %v49_v11  ;;  %v52_v15 = vld [vmem:[%s784_s1 + $0x48] sm:$0xff]  ;;  %v53_v17 = vld [vmem:[%s784_s1 + $0x50] sm:$0xff] }
   0x5   :  { %452 = vmatpush3.bf16.msra.mxu0 %v449_v3  ;;  %489 = vmatpush3.bf16.msra.mxu1 %v449_v3  ;;  %v51_v14 = vld [vmem:[%s784_s1 + $0x40] sm:$0xff]  ;;  %v54_v18 = vld [vmem:[%s784_s1 + $0x58] sm:$0xff]  ;;  %v56_v21 = vld [vmem:[%s784_s1 + $0x68] sm:$0xff] }
   0x6   :  { %454 = vmatprep.subr.bf16.mxu0 %v453_v5  ;;  %482 = vmatprep.subr.bf16.mxu1 %v453_v5  ;;  %v465_v16 = vpack.c.bf16 %v52_v15, %v51_v14  ;;  %v469_v19 = vpack.c.bf16 %v54_v18, %v53_v17  ;;  %v55_v20 = vld [vmem:[%s784_s1 + $0x60] sm:$0xff]  ;;  %v57_v23 = vld [vmem:[%s784_s1 + $0x70] sm:$0xff]  ;;  %v58_v24 = vld [vmem:[%s784_s1 + $0x78] sm:$0xff] }
   0x7   :  { %401 = vmatprep.mubr.f32.mxu0 %v11_v9  ;;  %425 = vmatprep.mubr.f32.mxu1 %v27_v10  ;;  %v473_v22 = vpack.c.bf16 %v56_v21, %v55_v20  ;;  %v477_v25 = vpack.c.bf16 %v58_v24, %v57_v23  ;;  %v12_v26 = vld [vmem:[%s785_s0 + $0x8] sm:$0xff]  ;;  %v13_v28 = vld [vmem:[%s785_s0 + $0x10] sm:$0xff]  ;;  %v14_v30 = vld [vmem:[%s785_s0 + $0x18] sm:$0xff] }
   0x8   :  { %v28_v27 = vld [vmem:[%s785_s0 + $0x88] sm:$0xff]  ;;  %v29_v29 = vld [vmem:[%s785_s0 + $0x90] sm:$0xff]  ;;  %v30_v31 = vld [vmem:[%s785_s0 + $0x98] sm:$0xff] }
   0x9   :  { %456 = vmatpush3.bf16.msra.mxu0 %v453_v5  ;;  %490 = vmatpush3.bf16.msra.mxu1 %v453_v5  ;;  %v15_v32 = vld [vmem:[%s785_s0 + $0x20] sm:$0xff]  ;;  %v16_v34 = vld [vmem:[%s785_s0 + $0x28] sm:$0xff]  ;;  %v17_v36 = vld [vmem:[%s785_s0 + $0x30] sm:$0xff] }
   0xa   :  { %458 = vmatprep.subr.bf16.mxu0 %v457_v8  ;;  %483 = vmatprep.subr.bf16.mxu1 %v457_v8  ;;  %v31_v33 = vld [vmem:[%s785_s0 + $0xa0] sm:$0xff]  ;;  %v32_v35 = vld [vmem:[%s785_s0 + $0xa8] sm:$0xff]  ;;  %v33_v37 = vld [vmem:[%s785_s0 + $0xb0] sm:$0xff] }
   0xb   :  { %v18_v38 = vld [vmem:[%s785_s0 + $0x38] sm:$0xff]  ;;  %v19_v40 = vld [vmem:[%s785_s0 + $0x40] sm:$0xff]  ;;  %v20_v42 = vld [vmem:[%s785_s0 + $0x48] sm:$0xff] }
   0xc   :  { %v34_v39 = vld [vmem:[%s785_s0 + $0xb8] sm:$0xff]  ;;  %v35_v41 = vld [vmem:[%s785_s0 + $0xc0] sm:$0xff]  ;;  %v36_v43 = vld [vmem:[%s785_s0 + $0xc8] sm:$0xff] }
   0xd   :  { %460 = vmatpush3.bf16.msra.mxu0 %v457_v8  ;;  %491 = vmatpush3.bf16.msra.mxu1 %v457_v8  ;;  %v21_v44 = vld [vmem:[%s785_s0 + $0x50] sm:$0xff]  ;;  %v22_v46 = vld [vmem:[%s785_s0 + $0x58] sm:$0xff]  ;;  %v23_v48 = vld [vmem:[%s785_s0 + $0x60] sm:$0xff] }
   0xe   :  { %462 = vmatprep.subr.bf16.mxu0 %v461_v13  ;;  %484 = vmatprep.subr.bf16.mxu1 %v461_v13  ;;  %v37_v45 = vld [vmem:[%s785_s0 + $0xd0] sm:$0xff]  ;;  %v38_v47 = vld [vmem:[%s785_s0 + $0xd8] sm:$0xff]  ;;  %v39_v49 = vld [vmem:[%s785_s0 + $0xe0] sm:$0xff] }
   0xf   :  { %v24_v50 = vld [vmem:[%s785_s0 + $0x68] sm:$0xff]  ;;  %v25_v52 = vld [vmem:[%s785_s0 + $0x70] sm:$0xff]  ;;  %v26_v54 = vld [vmem:[%s785_s0 + $0x78] sm:$0xff] }
  0x10   :  { %v40_v51 = vld [vmem:[%s785_s0 + $0xe8] sm:$0xff]  ;;  %v41_v53 = vld [vmem:[%s785_s0 + $0xf0] sm:$0xff]  ;;  %v42_v55 = vld [vmem:[%s785_s0 + $0xf8] sm:$0xff] }
  0x11   :  { %464 = vmatpush3.bf16.msra.mxu0 %v461_v13  ;;  %492 = vmatpush3.bf16.msra.mxu1 %v461_v13 }
  0x12   :  { %466 = vmatprep.subr.bf16.mxu0 %v465_v16  ;;  %485 = vmatprep.subr.bf16.mxu1 %v465_v16 }
  0x15   :  { %468 = vmatpush3.bf16.msra.mxu0 %v465_v16  ;;  %493 = vmatpush3.bf16.msra.mxu1 %v465_v16 }
  0x16   :  { %470 = vmatprep.subr.bf16.mxu0 %v469_v19  ;;  %486 = vmatprep.subr.bf16.mxu1 %v469_v19 }
  0x19   :  { %472 = vmatpush3.bf16.msra.mxu0 %v469_v19  ;;  %494 = vmatpush3.bf16.msra.mxu1 %v469_v19 }
  0x1a   :  { %474 = vmatprep.subr.bf16.mxu0 %v473_v22  ;;  %487 = vmatprep.subr.bf16.mxu1 %v473_v22 }
  0x1d   :  { %476 = vmatpush3.bf16.msra.mxu0 %v473_v22  ;;  %495 = vmatpush3.bf16.msra.mxu1 %v473_v22 }
  0x1e   :  { %478 = vmatprep.subr.bf16.mxu0 %v477_v25  ;;  %488 = vmatprep.subr.bf16.mxu1 %v477_v25 }
  0x21   :  { %480 = vmatpush3.bf16.msra.mxu0 %v477_v25  ;;  %496 = vmatpush3.bf16.msra.mxu1 %v477_v25 }
  0x24   :  { %402 = vmatmul.mubr.f32.vlgmr.msra.gmra.mrb[0].mxu0 %v12_v26  ;;  %426 = vmatmul.mubr.f32.vlgmr.msra.gmra.mrb[0].mxu1 %v28_v27 }
  0x25   :  { %404 = vmatprep.mubr.f32.mxu0 %v13_v28  ;;  %428 = vmatprep.mubr.f32.mxu1 %v29_v29 }
  0x28   :  { %405 = vmatmul.mubr.f32.gmra.mrb[2].mxu0 %v14_v30  ;;  %429 = vmatmul.mubr.f32.gmra.mrb[2].mxu1 %v30_v31 }
  0x29   :  { %407 = vmatprep.mubr.f32.mxu0 %v15_v32  ;;  %431 = vmatprep.mubr.f32.mxu1 %v31_v33 }
  0x2c   :  { %408 = vmatmul.mubr.f32.gmra.mrb[4].mxu0 %v16_v34  ;;  %432 = vmatmul.mubr.f32.gmra.mrb[4].mxu1 %v32_v35 }
  0x2d   :  { %410 = vmatprep.mubr.f32.mxu0 %v17_v36  ;;  %434 = vmatprep.mubr.f32.mxu1 %v33_v37 }
  0x30   :  { %411 = vmatmul.mubr.f32.gmra.mrb[6].mxu0 %v18_v38  ;;  %435 = vmatmul.mubr.f32.gmra.mrb[6].mxu1 %v34_v39 }
  0x31   :  { %413 = vmatprep.mubr.f32.mxu0 %v19_v40  ;;  %437 = vmatprep.mubr.f32.mxu1 %v35_v41 }
  0x34   :  { %414 = vmatmul.mubr.f32.gmra.mrb[8].mxu0 %v20_v42  ;;  %438 = vmatmul.mubr.f32.gmra.mrb[8].mxu1 %v36_v43 }
  0x35   :  { %416 = vmatprep.mubr.f32.mxu0 %v21_v44  ;;  %440 = vmatprep.mubr.f32.mxu1 %v37_v45 }
  0x38   :  { %417 = vmatmul.mubr.f32.gmra.mrb[10].mxu0 %v22_v46  ;;  %441 = vmatmul.mubr.f32.gmra.mrb[10].mxu1 %v38_v47 }
  0x39   :  { %419 = vmatprep.mubr.f32.mxu0 %v23_v48  ;;  %443 = vmatprep.mubr.f32.mxu1 %v39_v49 }
  0x3c   :  { %420 = vmatmul.mubr.f32.gmra.mrb[12].mxu0 %v24_v50  ;;  %444 = vmatmul.mubr.f32.gmra.mrb[12].mxu1 %v40_v51 }
  0x3d   :  { %422 = vmatprep.mubr.f32.mxu0 %v25_v52  ;;  %446 = vmatprep.mubr.f32.mxu1 %v41_v53 }
  0x40   :  { %423 = vmatmul.mubr.f32.gmra.mrb[14].mxu0 %v26_v54  ;;  %447 = vmatmul.mubr.f32.gmra.mrb[14].mxu1 %v42_v55 }
  0xf7   :  { %v403_v56 = vpop.f32.mrb[0].mxu0  ;;  %v427_v57 = vpop.f32.mrb[0].mxu1 }
  0xf8   :  { %286 = vst.msk [vmem:[%s786_s2 + $0x8] sm:$0xff] %vm284_vm0, %v403_v56  ;;  %302 = vst.msk [vmem:[%s786_s2 + $0x88] sm:$0xff] %vm284_vm0, %v427_v57  ;;  %v125_v58 = vpop.f32.mrb[1].mxu0  ;;  %v205_v59 = vpop.f32.mrb[1].mxu1 }
  0xf9   :  { %285 = vst.msk [vmem:[%s786_s2] sm:$0xff] %vm284_vm0, %v125_v58  ;;  %301 = vst.msk [vmem:[%s786_s2 + $0x80] sm:$0xff] %vm284_vm0, %v205_v59 }
  0xfb   :  { %v406_v60 = vpop.f32.mrb[2].mxu0  ;;  %v430_v61 = vpop.f32.mrb[2].mxu1 }
  0xfc   :  { %288 = vst.msk [vmem:[%s786_s2 + $0x18] sm:$0xff] %vm284_vm0, %v406_v60  ;;  %304 = vst.msk [vmem:[%s786_s2 + $0x98] sm:$0xff] %vm284_vm0, %v430_v61  ;;  %v135_v62 = vpop.f32.mrb[3].mxu0  ;;  %v215_v63 = vpop.f32.mrb[3].mxu1 }
  0xfd   :  { %287 = vst.msk [vmem:[%s786_s2 + $0x10] sm:$0xff] %vm284_vm0, %v135_v62  ;;  %303 = vst.msk [vmem:[%s786_s2 + $0x90] sm:$0xff] %vm284_vm0, %v215_v63 }
  0xff   :  { %v409_v0 = vpop.f32.mrb[4].mxu0  ;;  %v433_v1 = vpop.f32.mrb[4].mxu1 }
 0x100   :  { %290 = vst.msk [vmem:[%s786_s2 + $0x28] sm:$0xff] %vm284_vm0, %v409_v0  ;;  %306 = vst.msk [vmem:[%s786_s2 + $0xa8] sm:$0xff] %vm284_vm0, %v433_v1  ;;  %v145_v2 = vpop.f32.mrb[5].mxu0  ;;  %v225_v3 = vpop.f32.mrb[5].mxu1 }
 0x101   :  { %289 = vst.msk [vmem:[%s786_s2 + $0x20] sm:$0xff] %vm284_vm0, %v145_v2  ;;  %305 = vst.msk [vmem:[%s786_s2 + $0xa0] sm:$0xff] %vm284_vm0, %v225_v3 }
 0x103   :  { %v412_v4 = vpop.f32.mrb[6].mxu0  ;;  %v436_v5 = vpop.f32.mrb[6].mxu1 }
 0x104   :  { %292 = vst.msk [vmem:[%s786_s2 + $0x38] sm:$0xff] %vm284_vm0, %v412_v4  ;;  %308 = vst.msk [vmem:[%s786_s2 + $0xb8] sm:$0xff] %vm284_vm0, %v436_v5  ;;  %v155_v6 = vpop.f32.mrb[7].mxu0  ;;  %v235_v7 = vpop.f32.mrb[7].mxu1 }
 0x105   :  { %291 = vst.msk [vmem:[%s786_s2 + $0x30] sm:$0xff] %vm284_vm0, %v155_v6  ;;  %307 = vst.msk [vmem:[%s786_s2 + $0xb0] sm:$0xff] %vm284_vm0, %v235_v7 }
 0x107   :  { %v415_v8 = vpop.f32.mrb[8].mxu0  ;;  %v439_v9 = vpop.f32.mrb[8].mxu1 }
 0x108   :  { %294 = vst.msk [vmem:[%s786_s2 + $0x48] sm:$0xff] %vm284_vm0, %v415_v8  ;;  %310 = vst.msk [vmem:[%s786_s2 + $0xc8] sm:$0xff] %vm284_vm0, %v439_v9  ;;  %v165_v10 = vpop.f32.mrb[9].mxu0  ;;  %v245_v11 = vpop.f32.mrb[9].mxu1 }
 0x109   :  { %293 = vst.msk [vmem:[%s786_s2 + $0x40] sm:$0xff] %vm284_vm0, %v165_v10  ;;  %309 = vst.msk [vmem:[%s786_s2 + $0xc0] sm:$0xff] %vm284_vm0, %v245_v11 }
 0x10b   :  { %v418_v12 = vpop.f32.mrb[10].mxu0  ;;  %v442_v13 = vpop.f32.mrb[10].mxu1 }
 0x10c   :  { %296 = vst.msk [vmem:[%s786_s2 + $0x58] sm:$0xff] %vm284_vm0, %v418_v12  ;;  %312 = vst.msk [vmem:[%s786_s2 + $0xd8] sm:$0xff] %vm284_vm0, %v442_v13  ;;  %v175_v14 = vpop.f32.mrb[11].mxu0  ;;  %v255_v15 = vpop.f32.mrb[11].mxu1 }
 0x10d   :  { %295 = vst.msk [vmem:[%s786_s2 + $0x50] sm:$0xff] %vm284_vm0, %v175_v14  ;;  %311 = vst.msk [vmem:[%s786_s2 + $0xd0] sm:$0xff] %vm284_vm0, %v255_v15 }
 0x10f   :  { %v421_v16 = vpop.f32.mrb[12].mxu0  ;;  %v445_v17 = vpop.f32.mrb[12].mxu1 }
 0x110   :  { %298 = vst.msk [vmem:[%s786_s2 + $0x68] sm:$0xff] %vm284_vm0, %v421_v16  ;;  %314 = vst.msk [vmem:[%s786_s2 + $0xe8] sm:$0xff] %vm284_vm0, %v445_v17  ;;  %v185_v18 = vpop.f32.mrb[13].mxu0  ;;  %v265_v19 = vpop.f32.mrb[13].mxu1 }
 0x111   :  { %297 = vst.msk [vmem:[%s786_s2 + $0x60] sm:$0xff] %vm284_vm0, %v185_v18  ;;  %313 = vst.msk [vmem:[%s786_s2 + $0xe0] sm:$0xff] %vm284_vm0, %v265_v19 }
 0x113   :  { %v424_v20 = vpop.f32.mrb[14].mxu0  ;;  %v448_v21 = vpop.f32.mrb[14].mxu1 }
 0x114   :  { %300 = vst.msk [vmem:[%s786_s2 + $0x78] sm:$0xff] %vm284_vm0, %v424_v20  ;;  %316 = vst.msk [vmem:[%s786_s2 + $0xf8] sm:$0xff] %vm284_vm0, %v448_v21  ;;  %v195_v22 = vpop.f32.mrb[15].mxu0  ;;  %v275_v23 = vpop.f32.mrb[15].mxu1 }
 0x115   :  { %299 = vst.msk [vmem:[%s786_s2 + $0x70] sm:$0xff] %vm284_vm0, %v195_v22  ;;  %315 = vst.msk [vmem:[%s786_s2 + $0xf0] sm:$0xff] %vm284_vm0, %v275_v23 }

</bundles_post_ra>
